<compile_context>
chip_gen: v7x
topology: tpu7x:2x2x1
jax: 0.10.0
libtpu: 0.0.40
codegen_flags: <defaults>
</compile_context>

<pallas_src>
import functools

import jax
import jax.numpy as jnp
from jax.experimental import pallas as pl
from jax.experimental.pallas import tpu as pltpu


def _dp_hsan_kernel(x_ref, wt_ref, b_ref, o_ref, *, hw_true):
    # x_ref block: (NB, C, HWp); wt_ref: (C, C) (= conv weight transposed);
    # b_ref: (1, C); o_ref: (NB, C, HWp).
    x = x_ref[...]                                         # (NB, C, HWp) f32
    nb, c, hwp = x.shape

    if hwp != hw_true:
        # Spatial dim was padded with zeros in the wrapper: mask it out of the
        # reductions (zeros are fine for the sum; -inf for the max).
        lane = jax.lax.broadcasted_iota(jnp.int32, (nb, c, hwp), 2)
        valid = lane < hw_true
        x_sum_src = jnp.where(valid, x, 0.0)
        x_max_src = jnp.where(valid, x, -jnp.inf)
    else:
        x_sum_src = x
        x_max_src = x

    avg = jnp.sum(x_sum_src, axis=-1) / float(hw_true)     # (NB, C) global avg pool
    mx = jnp.max(x_max_src, axis=-1)                       # (NB, C) global max pool
    s = avg + mx                                           # (NB, C)

    # 1x1 conv over (C,1,1) tensors == batched dense matmul + bias, lane-dense output.
    out = jnp.dot(s, wt_ref[...], preferred_element_type=jnp.float32) + b_ref[...]
    gate = jax.nn.sigmoid(out)                             # (NB, C)

    o_ref[...] = x * gate[:, :, None]                      # broadcast over spatial


def _choose_nb(n, c, hw_pad, itemsize, target_block_bytes):
    """Largest divisor of n whose block is <= target bytes, keeping >=2 grid steps."""
    per_image = c * hw_pad * itemsize
    nb_cap = max(1, target_block_bytes // per_image)
    nb_cap = min(nb_cap, max(1, n // 2))   # >=2 grid steps when possible (2 TCs / megacore)
    nb = 1
    for d in range(1, int(nb_cap) + 1):
        if n % d == 0:
            nb = d
    return nb


def dp_hsan(x, w, b, *, target_block_bytes=2 << 20):
    """x: (N, C, H, W) f32; w: (C, C) f32 (Conv2d(C,C,1) weight squeezed); b: (C,) f32."""
    N, C, H, W = x.shape
    HW = H * W
    HW_pad = pl.cdiv(HW, 128) * 128

    x_flat = x.reshape(N, C, HW)
    if HW_pad != HW:
        x_flat = jnp.pad(x_flat, ((0, 0), (0, 0), (0, HW_pad - HW)))

    # Pre-transpose the conv weight so the kernel does a plain S @ W^T matmul
    # without an in-kernel transpose:  out[n, co] = sum_ci s[n, ci] * w[co, ci].
    w_t = jnp.transpose(w)            # (C_in, C_out)
    b2 = b.reshape(1, C)

    itemsize = jnp.dtype(x.dtype).itemsize
    nb = _choose_nb(N, C, HW_pad, itemsize, target_block_bytes)
    grid_n = N // nb

    kernel = functools.partial(_dp_hsan_kernel, hw_true=HW)

    out_flat = pl.pallas_call(
        kernel,
        out_shape=jax.ShapeDtypeStruct((N, C, HW_pad), x.dtype),
        grid=(grid_n,),
        in_specs=[
            pl.BlockSpec((nb, C, HW_pad), lambda n: (n, 0, 0)),
            pl.BlockSpec((C, C), lambda n: (0, 0)),
            pl.BlockSpec((1, C), lambda n: (0, 0)),
        ],
        out_specs=pl.BlockSpec((nb, C, HW_pad), lambda n: (n, 0, 0)),
        compiler_params=pltpu.CompilerParams(
            dimension_semantics=("parallel",),
            vmem_limit_bytes=48 * 1024 * 1024,
        ),
    )(x_flat, w_t, b2)

    if HW_pad != HW:
        out_flat = out_flat[:, :, :HW]
    return out_flat.reshape(N, C, H, W)


def dp_hsan_ref(x, w, b):
    """Pure-JAX reference matching the PyTorch forward exactly."""
    avg = jnp.mean(x, axis=(2, 3), keepdims=True)          # (N, C, 1, 1)
    mx = jnp.max(x, axis=(2, 3), keepdims=True)            # (N, C, 1, 1)
    s = (avg + mx)[..., 0, 0]                              # (N, C)
    out = s @ w.T + b                                      # (N, C)
    gate = jax.nn.sigmoid(out)[:, :, None, None]           # (N, C, 1, 1)
    return x * gate


if __name__ == "__main__":
    key = jax.random.PRNGKey(0)
    kx, kw, kb = jax.random.split(key, 3)

    N, C, H, W = 2, 4, 16, 16
    x = jax.random.normal(kx, (N, C, H, W), dtype=jnp.float32)

    # Deterministic synthetic Conv2d(C, C, 1) parameters.
    w = jax.random.normal(kw, (C, C), dtype=jnp.float32) * 0.1   # conv weight (C, C, 1, 1) squeezed
    b = jax.random.normal(kb, (C,), dtype=jnp.float32) * 0.1     # conv bias

    y = dp_hsan(x, w, b)
    jax.block_until_ready(y)

    y_ref = dp_hsan_ref(x, w, b)
    assert y.shape == (N, C, H, W)
    assert jnp.allclose(y, y_ref, atol=1e-5, rtol=1e-5), "mismatch vs reference"

    print("KERNEL_OK")
</pallas_src>

<mosaic_0001>
module attributes {stable_mosaic.version = 11 : i64} {
  func.func @_dp_hsan_kernel(%arg0: i32, %arg1: memref<1x4x256xf32, #tpu.memory_space<vmem>>, %arg2: memref<4x4xf32, #tpu.memory_space<vmem>>, %arg3: memref<1x4xf32, #tpu.memory_space<vmem>>, %arg4: memref<1x4x256xf32, #tpu.memory_space<vmem>>) attributes {dimension_semantics = [#tpu.dimension_semantics<parallel>], iteration_bounds = array<i64: 2>, scalar_prefetch = 0 : i64, scratch_operands = 0 : i64, tpu.core_type = #tpu.core_type<tc>, window_params = [{transform_indices = @transform_0, window_bounds = array<i64: 1, 4, 256>}, {pipeline_mode = #tpu.pipeline_mode<synchronous>, transform_indices = @transform_1, window_bounds = array<i64: 4, 4>}, {pipeline_mode = #tpu.pipeline_mode<synchronous>, transform_indices = @transform_2, window_bounds = array<i64: 1, 4>}, {transform_indices = @transform_3, window_bounds = array<i64: 1, 4, 256>}]} {
    %c0 = arith.constant 0 : index
    %c0_0 = arith.constant 0 : index
    %c0_1 = arith.constant 0 : index
    %0 = vector.load %arg1[%c0, %c0_0, %c0_1] : memref<1x4x256xf32, #tpu.memory_space<vmem>>, vector<1x4x256xf32>
    %cst = arith.constant dense<0.000000e+00> : vector<1x4xf32>
    %1 = vector.multi_reduction <add>, %0, %cst [2] : vector<1x4x256xf32> to vector<1x4xf32>
    %cst_2 = arith.constant 2.560000e+02 : f32
    %2 = vector.broadcast %cst_2 : f32 to vector<1x4xf32>
    %3 = arith.divf %1, %2 : vector<1x4xf32>
    %cst_3 = arith.constant dense<0xFF800000> : vector<1x4xf32>
    %4 = vector.multi_reduction <maximumf>, %0, %cst_3 [2] : vector<1x4x256xf32> to vector<1x4xf32>
    %5 = arith.addf %3, %4 : vector<1x4xf32>
    %c0_4 = arith.constant 0 : index
    %c0_5 = arith.constant 0 : index
    %6 = vector.load %arg2[%c0_4, %c0_5] : memref<4x4xf32, #tpu.memory_space<vmem>>, vector<4x4xf32>
    %cst_6 = arith.constant dense<0.000000e+00> : vector<1x4xf32>
    %7 = tpu.matmul %5, %6, %cst_6 {dimension_numbers = #tpu.dot_dimension_numbers<[1], [0], [0], [1], [0, 0, 1, 1], [], []>} : vector<1x4xf32>, vector<4x4xf32>, vector<1x4xf32> -> vector<1x4xf32>
    %c0_7 = arith.constant 0 : index
    %c0_8 = arith.constant 0 : index
    %8 = vector.load %arg3[%c0_7, %c0_8] : memref<1x4xf32, #tpu.memory_space<vmem>>, vector<1x4xf32>
    %9 = arith.addf %7, %8 : vector<1x4xf32>
    %10 = arith.negf %9 : vector<1x4xf32>
    %11 = math.exp %10 : vector<1x4xf32>
    %cst_9 = arith.constant 1.000000e+00 : f32
    %12 = vector.broadcast %cst_9 : f32 to vector<1x4xf32>
    %13 = arith.addf %12, %11 : vector<1x4xf32>
    %14 = arith.divf %12, %13 : vector<1x4xf32>
    %15 = vector.shape_cast %14 : vector<1x4xf32> to vector<1x4x1xf32>
    %16 = vector.broadcast %15 : vector<1x4x1xf32> to vector<1x4x256xf32>
    %17 = arith.mulf %0, %16 : vector<1x4x256xf32>
    %c0_10 = arith.constant 0 : index
    %c0_11 = arith.constant 0 : index
    %c0_12 = arith.constant 0 : index
    %18 = vector.load %arg4[%c0_10, %c0_11, %c0_12] : memref<1x4x256xf32, #tpu.memory_space<vmem>>, vector<1x4x256xf32>
    tpu.vector_store %arg4[%c0_10, %c0_11, %c0_12], %17 {strides = array<i32>} : memref<1x4x256xf32, #tpu.memory_space<vmem>>, vector<1x4x256xf32>,
    return
  }
  func.func @transform_0(%arg0: i32) -> (i32, i32, i32) {
    %c0_i32 = arith.constant 0 : i32
    %c0_i32_0 = arith.constant 0 : i32
    %c0_i32_1 = arith.constant 0 : i32
    return %arg0, %c0_i32, %c0_i32_0 : i32, i32, i32
  }
  func.func @transform_1(%arg0: i32) -> (i32, i32) {
    %c0_i32 = arith.constant 0 : i32
    %c0_i32_0 = arith.constant 0 : i32
    %c0_i32_1 = arith.constant 0 : i32
    return %c0_i32, %c0_i32_0 : i32, i32
  }
  func.func @transform_2(%arg0: i32) -> (i32, i32) {
    %c0_i32 = arith.constant 0 : i32
    %c0_i32_0 = arith.constant 0 : i32
    %c0_i32_1 = arith.constant 0 : i32
    return %c0_i32, %c0_i32_0 : i32, i32
  }
  func.func @transform_3(%arg0: i32) -> (i32, i32, i32) {
    %c0_i32 = arith.constant 0 : i32
    %c0_i32_0 = arith.constant 0 : i32
    %c0_i32_1 = arith.constant 0 : i32
    return %arg0, %c0_i32, %c0_i32_0 : i32, i32, i32
  }
}

</mosaic_0001>

<bundles_post_ra>
// kernel: tpu_custom_call.1
= control target key start
LH: loop header
LB: loop body
LE: loop exit
PB: predicated region body
PF: predicated region fallthrough
CT: control target
= control target key end

     0   :  { %8 = vsyncpa [#allocation3], 0  ;;  %s879_s0 = inlined_call_operand.hbm [shape: f32[2,4,256], index: 0, kind: input, shape index: {}]   ;;  %s880_s1 = inlined_call_operand.hbm [shape: f32[4,4], index: 1, kind: input, shape index: {}]   ;;  %s881_s2 = inlined_call_operand.vmem [shape: f32[1,4], index: 2, kind: input, shape index: {}]   ;;  %s882_s3 = inlined_call_operand.hbm [shape: f32[2,4,256], index: 3, kind: output, shape index: {}]  }
   0x1   :  { %10 = vsyncpa [#allocation3 + $0x1], 0 }
   0x2   :  { %11 = vsyncpa [#allocation6], 0 }
   0x3   :  { %12 = vsyncpa [#allocation4], 0 }
   0x4   :  { %14 = vsyncpa [#allocation4 + $0x1], 0  ;;  %s671_s12 = smov 0   ;;  %s673_s13 = smov 0  }
   0x5   :  { %s675_s14 = smov 0   ;;  %s677_s15 = smov 0  }
   0x6 LB: > { %s692_s16 = sadd.s32 4294967295, %s643_s15   ;;  %s422_s17 = sadd.s32 4294967294, %s643_s15   ;;  %s643_s15 = sphi %s677_s15, %s906_s15   ;;  %s639_s14 = sphi %s675_s14, %s905_s14   ;;  %s635_s13 = sphi %s673_s13, %s904_s13   ;;  %s631_s12 = sphi %s671_s12, %s903_s12  }
   0x7   : > { %p40_p0 = scmp.ne.s32.totalorder %s635_s13, %s631_s12  ;;  %p883_p1 = scmp.eq.s32.totalorder %s692_s16, 0 }
   0x8   : > { %p112_p3 = scmp.eq.s32.totalorder %s422_s17, 1  ;;  %p423_p5 = scmp.ge.s32.totalorder %s643_s15, 1 }
   0x9   : > { %p701_p4 = por %p883_p1, %p40_p0  ;;  %p119_p7 = scmp.lt.s32.totalorder %s643_s15, 3 }
   0xa   : > { %p706_p6 = por %p112_p3, %p40_p0  ;;  %s645_s21 = smov [#allocation5]  }
   0xb   : > { %s886_s18 = scalar_select %p701_p4, 1, 0 }
   0xc   : > { %s887_s19 = scalar_select %p706_p6, 1, 0 }
   0xd   : > { %p711_p8 = pnand %p423_p5, %p119_p7  ;;  %s132_s22 = sshll.u32 %s645_s21, 4  ;;  %s133_s22 = int_to_ptr.vmem [resolvable:$true] %s132_s22 }
   0xe   : > { %s719_s23 = sadd.s32 1, %s643_s15   ;;  %s27_s27 = sadd.s32 1, %s639_s14 }
   0xf   : > { %s888_s20 = scalar_select %p711_p8, 1, 0 }
  0x10   : > { %p458_p10 = pneg %p711_p8  ;;  %s24_s25 = ssub.s32 %s643_s15, %s719_s23 }
  0x11   : > { %p729_p12 = scmp.eq.s32.totalorder %s24_s25, 0  ;;  %s515_s30 = scalar_lea.hbm %s880_s1, 64 }
  0x12   : > { %p723_p11 = pnand %p458_p10, %p883_p1  ;;  %p516_p0 = scmp.ne.s32.totalorder %s880_s1, %s515_s30 }
  0x13   : > { %s890_s26 = scalar_select %p729_p12, 1, 0 }
  0x14   : > { %p517_p3 = pneg %p723_p11  ;;  %p522_p10 = scmp.lt.u32.totalorder %s515_s30, %s880_s1 }
  0x16   : > { %p518_p5 = pnand %p517_p3, %p516_p0 }
  0x18   : > { %p519_p7 = pneg %p518_p5 }
  0x1a   : > { %p524_p9 = pnand %p522_p10, %p519_p7 }
  0x1c   : > { %527 = shalt.err (!%p524_p9)
}
  0x1d   : > { %s528_s8 = scalar_lea.vmem %s133_s22, 64  ;;  %p536_p6 = scmp.lt.s32.totalorder %s133_s22, %s133_s22 }
  0x1e   : > { %p529_p1 = scmp.ne.s32.totalorder %s133_s22, %s528_s8  ;;  %p537_p4 = scmp.lt.s32.totalorder %s528_s8, %s528_s8 }
  0x20   : > { %p531_p2 = pnand %p529_p1, %p517_p3  ;;  %p538_p8 = por %p537_p4, %p536_p6 }
  0x22   : > { %p532_p13 = pneg %p531_p2 }
  0x24   : > { %p539_p12 = pnand %p538_p8, %p532_p13 }
  0x26   : > { %542 = shalt.err (!%p539_p12)
}
  0x27   : > { %461 = dma.hbm_to_vmem [thread:$0]  (!%p723_p11), %s880_s1, 64, %s133_s22, [#allocation6]  }
  0x28   : > { %p891_p1 = scmp.ne.s32.totalorder %s890_s26, 0  ;;  %p35_p2 = scmp.eq.s32.totalorder %s643_s15, 0 }
  0x29   : > { %p892_p4 = scmp.ne.s32.totalorder %s639_s14, %s635_s13  ;;  %p893_p6 = scmp.eq.s32.totalorder %s692_s16, 1 }
  0x2a   : > { %s755_s11 = scalar_select %p891_p1, %s639_s14, %s27_s27  }
  0x2b   : > { %p763_p8 = por %p893_p6, %p892_p4  ;;  %p471_p9 = scmp.lt.s32.totalorder %s643_s15, 2 }
  0x2c   : > { %s146_s21 = sand.u32 1, %s639_s14   ;;  %p895_p12 = pmov %p892_p4 }
  0x2d   : > { %s426_s24 = sshll.u32 %s146_s21, 3  ;;  %s441_s25 = sshll.u32 %s643_s15, 7 }
  0x2e   : > { %p36_p13 = por %p35_p2, %p895_p12  ;;  %s776_s22 = scalar_lea.hbm %s879_s0, %s441_s25 }
  0x2f   : > { %s150_s26 = scalar_lea.vmem [#allocation2], %s426_s24  ;;  %s147_s4 = scalar_lea.sflag [#allocation3], %s146_s21 }
  0x30   : > { %s158_s27 = sshll.u32 %s150_s26, 4  ;;  %p778_p11 = pnand %p471_p9, %p36_p13  ;;  %s782_s27 = int_to_ptr.vmem [resolvable:$true] %s158_s27 }
  0x31   : > { %s543_s5 = scalar_lea.hbm %s776_s22, 128  ;;  %s548_s8 = scalar_lea.hbm %s879_s0, 256 }
  0x32   : > { %p544_p0 = scmp.ne.s32.totalorder %s776_s22, %s543_s5  ;;  %p545_p3 = pneg %p778_p11 }
  0x33   : > { %p549_p10 = scmp.lt.u32.totalorder %s776_s22, %s879_s0  ;;  %p550_p1 = scmp.lt.u32.totalorder %s548_s8, %s543_s5 }
  0x34   : > { %p546_p5 = pnand %p545_p3, %p544_p0  ;;  %p552_p4 = scmp.lt.u32.totalorder %s543_s5, %s776_s22 }
  0x35   : > { %p551_p2 = por %p550_p1, %p549_p10 }
  0x36   : > { %p547_p7 = pneg %p546_p5 }
  0x37   : > { %p553_p6 = por %p552_p4, %p551_p2 }
  0x39   : > { %p554_p9 = pnand %p553_p6, %p547_p7 }
  0x3b   : > { %557 = shalt.err (!%p554_p9)
}
  0x3c   : > { %s558_s21 = scalar_lea.vmem %s782_s27, 128  ;;  %s646_s24 = smov [#allocation2]  }
  0x3d   : > { %p559_p12 = scmp.ne.s32.totalorder %s782_s27, %s558_s21  ;;  %s563_s25 = sshll.u32 %s646_s24, 4  ;;  %s564_s25 = int_to_ptr.vmem [resolvable:$false] %s563_s25 }
  0x3e   : > { %s565_s28 = scalar_lea.vmem %s564_s25, 256  ;;  %p566_p5 = scmp.lt.s32.totalorder %s782_s27, %s564_s25 }
  0x3f   : > { %p561_p13 = pnand %p559_p12, %p545_p3  ;;  %p567_p10 = scmp.lt.s32.totalorder %s565_s28, %s558_s21 }
  0x41   : > { %p562_p0 = pneg %p561_p13  ;;  %p568_p1 = por %p567_p10, %p566_p5 }
  0x43   : > { %p569_p2 = pnand %p568_p1, %p562_p0 }
  0x45   : > { %572 = shalt.err (!%p569_p2)
}
  0x46   : > { %465 = dma.hbm_to_vmem [thread:$0]  (!%p778_p11), %s776_s22, 128, %s782_s27, %s147_s4  }
  0x47   : > { %p897_p7 = scmp.ne.s32.totalorder %s888_s20, 0 }
  0x48   : > { %s812_s29 = sand.u32 (!%p897_p7), 1, %s635_s13   ;;  %p898_p3 = scmp.ne.s32.totalorder (!%p897_p7), %s886_s18, 0 }
  0x49   : > { %167 = sbr.rel (%p897_p7) target bundleno = 615 (0x267), region = 32  ;;  %s430_s26 = sshll.u32 (!%p897_p7), %s812_s29, 3 }
  0x4a   : > { %s170_s5 = scalar_lea.sflag (!%p897_p7), [#allocation3], %s812_s29  ;;  %s173_s6 = scalar_lea.vmem (!%p897_p7), [#allocation2], %s430_s26 }
  0x50   : > { %618 = dma.done.wait (%p898_p3), %s170_s5, 128  }
  0x51   : > { %620 = vsyncadd (%p898_p3), %s170_s5, 4294967168  ;;  %p899_p11 = scmp.eq.s32.totalorder %s692_s16, 0 }
  0x53   : > { %622 = dma.done.wait (%p899_p11), [#allocation6], 64   ;;  %p900_p4 = pmov %p899_p11 }
  0x54   : > { %vm204_vm0 = vcmask 1043456   ;;  %v200_v0 = vld [vmem:[%s173_s6] sm:$0xff]  ;;  %v647_v8 = vmov 0.0   ;;  %v218_v9 = vld [vmem:[#allocation5] sm:$0xf]  ;;  %vm648_vm1 = vmmov 0   ;;  %v221_v10 = vlaneseq }
  0x55   : > { %624 = vsyncadd (%p900_p4), [#allocation6], 4294967232  ;;  %v202_v1 = vcombine.high %v200_v0, %v200_v0  ;;  %v205_v2 = vsel %vm204_vm0, %v200_v0, 0.0  ;;  %v212_v4 = vsel %vm204_vm0, %v200_v0, -inf  ;;  %445 = vmatprep.subr.mxu0 %v647_v8  ;;  %447 = vmatprep.mubr.msk.f32.mxu0 %vm648_vm1, %v647_v8  ;;  %vm227_vm2 = vcmask 31744   ;;  %s442_s22 = sshll.u32 %s692_s16, 7 }
  0x56   : > { %446 = vmatpush3.msk.msra.mxu0 %vm204_vm0, %v218_v9  ;;  %v222_v11 = vand.u32 127, %v221_v10  ;;  %v224_v12 = vshrl.u32 %v221_v10, 7  ;;  %v219_v19 = vld [vmem:[%s881_s2] sm:$0x1]  ;;  %v649_v29 = vmov 839922192   ;;  %s835_s8 = scalar_lea.hbm %s882_s3, %s442_s22 }
  0x57   : > { %v206_v3 = vsel %vm204_vm0, %v202_v1, 0.0  ;;  %v213_v5 = vsel %vm204_vm0, %v202_v1, -inf  ;;  %v318_v30 = vunpack.c.l.s4 %v649_v29  ;;  %s199_s27 = scalar_lea.vmem [#allocation7], %s430_s26  ;;  %s328_s9 = scalar_lea.sflag [#allocation4], %s812_s29 }
  0x58   : > { %v207_v6 = vadd.f32 %v206_v3, %v205_v2  ;;  %v214_v7 = vmax.f32 %v212_v4, %v213_v5  ;;  %v225_v15 = vsub.s32 %v222_v11, %v224_v12  ;;  %v311_v26 = vsub.s32 0, %v224_v12  ;;  %s342_s30 = sshll.u32 %s199_s27, 4  ;;  %s650_s16 = smov [#allocation7]   ;;  %s837_s30 = int_to_ptr.vmem [resolvable:$true] %s342_s30 }
  0x59   : > { %v319_v31 = vunpack.c.0.s8 %v318_v30  ;;  %s573_s10 = scalar_lea.vmem %s837_s30, 128  ;;  %s577_s21 = sshll.u32 %s650_s16, 4  ;;  %s578_s21 = int_to_ptr.vmem [resolvable:$false] %s577_s21 }
  0x5a   : > { %208 = vadd.xlane.f32.xlu0 %v207_v6  ;;  %p574_p6 = scmp.ne.s32.totalorder %s837_s30, %s573_s10  ;;  %s579_s24 = scalar_lea.vmem %s578_s21, 256 }
  0x5b   : > { %v322_v32 = vsub.s32 %v319_v31, %v224_v12  ;;  %p580_p13 = scmp.lt.s32.totalorder %s837_s30, %s578_s21  ;;  %p581_p0 = scmp.lt.s32.totalorder %s579_s24, %s573_s10 }
  0x5c   : > { %p575_p9 = pnand %p574_p6, %p763_p8 }
  0x5d   : > { %p582_p5 = por %p581_p0, %p580_p13 }
  0x5e   : > { %215 = vmax.xlane.f32.xlu0 %v214_v7  ;;  %p576_p12 = pneg %p575_p9 }
  0x60   : > { %p583_p10 = pnand %p582_p5, %p576_p12 }
  0xe7   : > { %v209_v13 = vpop.xlane.xlu0 %208 }
  0xe8   : > { %v211_v14 = vmul.f32 0.00390625, %v209_v13 }
  0xeb   : > { %v216_v16 = vpop.xlane.xlu0 %215 }
  0xec   : > { %v217_v17 = vadd.f32 %v216_v16, %v211_v14 }
  0xee   : > { %v226_v18 = vrot.slane %v217_v17, %v225_v15 }
  0xf0   : > { %448 = vmatmul.mubr.msk.f32.vlgmr.msra.gmra.mrb[0].mxu0 %vm227_vm2, %v226_v18 }
 0x1c3   : > { %v299_v20 = vpop.f32.mrb[0].mxu0 }
 0x1c4   : > { %v300_v21 = vadd.f32 %v299_v20, %v219_v19  ;;  %v449_v22 = vpop.f32.mrb[1].mxu0 }
 0x1c6   : > { %v435_v23 = vmul.f32 -1.442695, %v300_v21 }
 0x1c8   : > { %511 = vpow2.f32 %v435_v23 }
 0x1d2   : > { %v512_v24 = vpop.eup %511 }
 0x1d3   : > { %v306_v25 = vadd.f32 1.0, %v512_v24 }
 0x1d5   : > { %513 = vrcp.f32 %v306_v25 }
 0x1df   : > { %v514_v27 = vpop.eup %513 }
 0x1e0   : > { %v312_v28 = vrot.slane %v514_v27, %v311_v26 }
 0x1e2   : > { %314 = vbcast.lane.b32.xlu1 %v312_v28, 256 }
 0x254   : > { %v315_v33 = vpop.permute.xlu1 %314 }
 0x255   : > { %v323_v34 = vrot.slane %v315_v33, %v322_v32 }
 0x257   : > { %v325_v35 = vmul.f32 %v323_v34, %v200_v0 }
 0x259   : > { %326 = vst [vmem:[%s199_s27] sm:$0xff] %v325_v35 }
 0x25a   : > { %586 = shalt.err (!%p583_p10)
}
 0x25b   : > { %s587_s25 = scalar_lea.hbm %s835_s8, 128  ;;  %s591_s26 = scalar_lea.hbm %s882_s3, 256 }
 0x25c   : > { %p588_p1 = scmp.ne.s32.totalorder %s835_s8, %s587_s25  ;;  %p592_p3 = scmp.lt.u32.totalorder %s835_s8, %s882_s3 }
 0x25d   : > { %p593_p11 = scmp.lt.u32.totalorder %s591_s26, %s587_s25  ;;  %p595_p6 = scmp.lt.u32.totalorder %s587_s25, %s835_s8 }
 0x25e   : > { %p589_p2 = pnand %p588_p1, %p763_p8 }
 0x25f   : > { %p594_p4 = por %p593_p11, %p592_p3 }
 0x260   : > { %p590_p7 = pneg %p589_p2 }
 0x261   : > { %p596_p9 = por %p595_p6, %p594_p4 }
 0x263   : > { %p597_p12 = pnand %p596_p9, %p590_p7 }
 0x265   : > { %600 = shalt.err (!%p597_p12)
}
 0x266   : > { %456 = dma.vmem_to_hbm [thread:$0]  (%p763_p8), %s837_s30, 128, %s835_s8, %s328_s9  }
 0x267 PF: > { %s354_s18 = sand.u32 1, %s631_s12   ;;  %p901_p13 = scmp.ne.s32.totalorder %s887_s19, 0 }
 0x268   : > { %p902_p0 = scmp.ge.s32.totalorder %s643_s15, 2  ;;  %s355_s20 = scalar_lea.sflag [#allocation4], %s354_s18 }
 0x26a   : > { %p467_p5 = pnand %p902_p0, %p901_p13 }
 0x26c   : > { %626 = dma.done.wait (!%p467_p5), %s355_s20, 128  }
 0x26d   : > { %628 = vsyncadd (!%p467_p5), %s355_s20, 4294967168  ;;  %p17_p10 = scmp.ge.s32.totalorder %s719_s23, 4   ;;  %s903_s12 = smov %s635_s13 }
 0x26e   : > { %s904_s13 = smov %s639_s14  ;;  %s905_s14 = smov %s755_s11 }
 0x26f   : > { %s906_s15 = smov %s719_s23  ;;  %19 = sbr.rel (!%p17_p10) target bundleno = 6 (0x6), region = 81 }
 0x276   :  { %360 = vsyncpa [#allocation3], 1 }
 0x277   :  { %362 = vsyncpa [#allocation3 + $0x1], 1 }
 0x278   :  { %363 = vsyncpa [#allocation6], 1 }
 0x279   :  { %364 = vsyncpa [#allocation4], 1 }
 0x27a   :  { %366 = vsyncpa [#allocation4 + $0x1], 1 }

</bundles_post_ra>
